<compile_context>
chip_gen: v7x
topology: tpu7x:2x2x1
jax: 0.10.0
libtpu: 0.0.40
codegen_flags: <defaults>
</compile_context>

<pallas_src>
import jax
import jax.numpy as jnp
from jax.experimental import pallas as pl
from jax.experimental.pallas import tpu as pltpu


# ---------------------------------------------------------------------------
# Kernels
# ---------------------------------------------------------------------------
def _context_attention_mh_kernel(x_ref, wt_ref, b_ref, c_ref, e_ref, o_ref):
    tb, L, S = x_ref.shape
    H = c_ref.shape[1]

    x = x_ref[...]                                     # (TB, L, S) compute dtype
    xf = x.reshape(tb * L, S)                          # fused batch*seq rows

    # Linear + tanh: one big (TB*L, S) @ (S, S) MXU matmul, f32 accumulate.
    a = jnp.tanh(
        jnp.dot(xf, wt_ref[...], preferred_element_type=jnp.float32)
        + b_ref[...]
    )                                                  # (TB*L, S) f32

    # Per-head similarity with the context vector (block-sparse matmul via C).
    s = jnp.dot(a, c_ref[...], preferred_element_type=jnp.float32)  # (TB*L, H)
    s = s.reshape(tb, L, H)

    # Softmax over the sequence axis (dim=1 of the torch (B, L, S) tensor).
    m = jnp.max(s, axis=1, keepdims=True)              # (TB, 1, H)
    p = jnp.exp(s - m)                                 # (TB, L, H)
    denom = jnp.sum(p, axis=1, keepdims=True)          # (TB, 1, H)
    w = p * pl.reciprocal(denom, approx=True)          # (TB, L, H)

    # Expand each head weight over its head_size feature slice.
    wf = jnp.dot(w.reshape(tb * L, H), e_ref[...],
                 preferred_element_type=jnp.float32)   # (TB*L, S)

    # Weighted sum over the sequence axis (f32 accumulate).
    out = jnp.sum(wf.reshape(tb, L, S) * x.astype(jnp.float32), axis=1)  # (TB, S)
    o_ref[...] = out.astype(o_ref.dtype)


def _context_attention_h1_kernel(x_ref, wt_ref, b_ref, o_ref):
    tb, L, S = x_ref.shape

    x = x_ref[...]                                     # (TB, L, S)
    xf = x.reshape(tb * L, S)

    # Linear (no tanh in the head_size == 1 branch of the PyTorch module).
    a = (jnp.dot(xf, wt_ref[...], preferred_element_type=jnp.float32)
         + b_ref[...])                                 # (TB*L, S) f32
    a = a.reshape(tb, L, S)

    # Element-wise softmax over the sequence axis.
    m = jnp.max(a, axis=1, keepdims=True)              # (TB, 1, S)
    p = jnp.exp(a - m)
    denom = jnp.sum(p, axis=1, keepdims=True)
    w = p * pl.reciprocal(denom, approx=True)          # (TB, L, S)

    out = jnp.sum(w * x.astype(jnp.float32), axis=1)   # (TB, S)
    o_ref[...] = out.astype(o_ref.dtype)


# ---------------------------------------------------------------------------
# Block-size / VMEM heuristics
# ---------------------------------------------------------------------------
def _choose_block_batch(B, L, S, x_itemsize, vmem_budget_bytes):
    """Pick the per-grid-step batch block (tb) from a VMEM working-set budget.

    Per batch element one grid step holds roughly:
      2 * L*S*x_itemsize   double-buffered x tile
      4 * L*S*4            live f32 temporaries (a, p/w, wf, weighted product)
    Big blocks amortize the ~0.35 us per-grid-step overhead.  For B >= 16 we
    keep at least two grid steps (v7x dual-TensorCore sharding / pipeline
    depth) and keep tb a multiple of 8 so the (tb, S) output block stays
    sublane-aligned (dense stores, no (1, S) masked partial stores).
    """
    if B < 16:
        return B                                   # single step; out block == full array
    per_b = L * S * (2 * x_itemsize + 4 * 4)
    cap = max(8, (int(vmem_budget_bytes) // per_b) // 8 * 8)
    b8 = -(-B // 8) * 8
    hi = min(cap, b8 - 8)                          # multiple of 8, guarantees >= 2 steps
    best, best_key = 8, None
    for t in range(8, hi + 1, 8):
        steps = -(-B // t)
        pad = steps * t - B
        key = (steps, pad, -t)                     # fewest steps, then least padding
        if best_key is None or key < best_key:
            best, best_key = t, key
    return best


def _vmem_limit_bytes(tb, L, S, itemsize, num_head):
    est = (2 * tb * L * S * itemsize               # double-buffered x tile
           + 5 * tb * L * S * 4                    # live f32 temporaries
           + 2 * (S * S * itemsize + S * 4 + 2 * S * max(num_head, 1) * 4)
           + 2 * tb * S * 4)                       # output block
    # Leave headroom; clamp to a range safe across v5e/v6e/v7x (reduce
    # vmem_budget_bytes on v7x's 64 MiB VMEM if you push the budget up).
    return int(max(32 * 1024 * 1024, min(est * 3 // 2, 96 * 1024 * 1024)))


# ---------------------------------------------------------------------------
# Wrapper
# ---------------------------------------------------------------------------
def context_attention(x, weight, bias, context_vector, num_head, *,
                      block_batch=None, compute_dtype=jnp.bfloat16,
                      vmem_budget_bytes=16 * 1024 * 1024):
    """ContextAttention forward.

    x: (B, L, S); weight: (S, S) torch-Linear layout; bias: (S,);
    context_vector: (num_head, head_size, 1).
    compute_dtype: dtype for the x / W^T matmul inputs (default bf16 — halves
      the HBM x stream; accumulation / softmax stay f32).  Pass jnp.float32
      (or None = x.dtype) for strict parity with the PyTorch module.
    vmem_budget_bytes: working-set budget used to size the batch block; use a
      smaller budget (e.g. 8-12 MiB) on v7x (64 MiB VMEM per TensorCore).
    """
    B, L, S = x.shape
    if S % num_head != 0:
        raise ValueError("size must be dividable by num_head", S, num_head)
    head_size = S // num_head
    out_dtype = x.dtype

    if compute_dtype is None:
        compute_dtype = x.dtype
    compute_dtype = jnp.dtype(compute_dtype)
    itemsize = compute_dtype.itemsize
    out_itemsize = jnp.dtype(out_dtype).itemsize

    if block_batch is None:
        tb = _choose_block_batch(B, L, S, itemsize, vmem_budget_bytes)
    else:
        tb = int(block_batch)
        if tb < 1:
            raise ValueError("block_batch must be >= 1")
    n_steps = -(-B // tb)
    Bp = n_steps * tb
    if n_steps > 1 and tb % 8 != 0:
        raise ValueError(
            "block_batch must be a multiple of 8 when it does not cover the "
            f"whole batch (got block_batch={tb}, batch={B})")
    grid = (n_steps,)

    x_in = x.astype(compute_dtype)
    if Bp != B:
        # Zero-pad the batch; padded rows compute harmless values and are
        # sliced away below (keeps blocks sublane/lane dense, no tb=1 path).
        x_in = jnp.pad(x_in, ((0, Bp - B), (0, 0), (0, 0)))
    wt = weight.T.astype(compute_dtype)                # (S, S): kernel does x @ wt
    b2 = bias.reshape(1, S).astype(jnp.float32)

    cparams = pltpu.CompilerParams(
        dimension_semantics=("parallel",),
        vmem_limit_bytes=_vmem_limit_bytes(tb, L, S, itemsize, num_head))

    if head_size == 1:
        cost = pl.CostEstimate(
            flops=2 * Bp * L * S * S + 3 * Bp * L * S,
            transcendentals=Bp * L * S + Bp * S,
            bytes_accessed=(Bp * L * S * itemsize + S * S * itemsize + S * 4
                            + Bp * S * out_itemsize))
        out = pl.pallas_call(
            _context_attention_h1_kernel,
            out_shape=jax.ShapeDtypeStruct((Bp, S), out_dtype),
            grid_spec=pltpu.PrefetchScalarGridSpec(
                num_scalar_prefetch=0,
                grid=grid,
                in_specs=[
                    pl.BlockSpec((tb, L, S), lambda b: (b, 0, 0)),   # x tile
                    pl.BlockSpec((S, S), lambda b: (0, 0)),          # W^T
                    pl.BlockSpec((1, S), lambda b: (0, 0)),          # bias
                ],
                out_specs=pl.BlockSpec((tb, S), lambda b: (b, 0)),
            ),
            compiler_params=cparams,
            cost_estimate=cost,
        )(x_in, wt, b2)
        return out[:B] if Bp != B else out

    # Multi-head path: build structured C / E matrices (f32).
    cv = context_vector[..., 0].astype(jnp.float32)                   # (H, hs)
    # E[h, j] = 1 if feature j belongs to head h (j // hs == h), else 0.
    E = jnp.repeat(jnp.eye(num_head, dtype=jnp.float32), head_size, axis=1)  # (H, S)
    # C[j, h] = context_vector[h, j - h*hs] on head h's slice, else 0.
    C = (E * cv.reshape(1, S)).T                                      # (S, H)

    cost = pl.CostEstimate(
        flops=(2 * Bp * L * S * S + 4 * Bp * L * S * num_head + 3 * Bp * L * S),
        transcendentals=Bp * L * S + Bp * L * num_head + Bp * num_head,
        bytes_accessed=(Bp * L * S * itemsize + S * S * itemsize + S * 4
                        + 2 * S * num_head * 4 + Bp * S * out_itemsize))

    out = pl.pallas_call(
        _context_attention_mh_kernel,
        out_shape=jax.ShapeDtypeStruct((Bp, S), out_dtype),
        grid_spec=pltpu.PrefetchScalarGridSpec(
            num_scalar_prefetch=0,
            grid=grid,
            in_specs=[
                pl.BlockSpec((tb, L, S), lambda b: (b, 0, 0)),        # x tile
                pl.BlockSpec((S, S), lambda b: (0, 0)),               # W^T
                pl.BlockSpec((1, S), lambda b: (0, 0)),               # bias
                pl.BlockSpec((S, num_head), lambda b: (0, 0)),        # C
                pl.BlockSpec((num_head, S), lambda b: (0, 0)),        # E
            ],
            out_specs=pl.BlockSpec((tb, S), lambda b: (b, 0)),
        ),
        compiler_params=cparams,
        cost_estimate=cost,
    )(x_in, wt, b2, C, E)
    return out[:B] if Bp != B else out


# ---------------------------------------------------------------------------
# Pure-JAX references
# ---------------------------------------------------------------------------
def _reference_multihead(x, weight, bias, context_vector, num_head):
    B, L, S = x.shape
    hs = S // num_head
    a = jnp.tanh(jnp.einsum("bls,os->blo", x, weight) + bias)
    s = jnp.einsum("blhd,hd->blh", a.reshape(B, L, num_head, hs),
                   context_vector[..., 0])
    w = jax.nn.softmax(s, axis=1)
    out_h = jnp.einsum("blh,blhd->bhd", w, x.reshape(B, L, num_head, hs))
    return out_h.reshape(B, S)


def _reference_h1(x, weight, bias):
    a = jnp.einsum("bls,os->blo", x, weight) + bias
    w = jax.nn.softmax(a, axis=1)
    return jnp.sum(w * x, axis=1)


# ---------------------------------------------------------------------------
if __name__ == "__main__":
    key = jax.random.PRNGKey(0)
    k1, k2, k3, k4, k5, k6, k7, k8 = jax.random.split(key, 8)

    # --- multi-head path (head_size != 1) ---
    B, L, size, num_head = 16, 8, 32, 4
    head_size = size // num_head
    bound = 1.0 / (size ** 0.5)
    weight = jax.random.uniform(k1, (size, size), jnp.float32, -bound, bound)
    bias = jax.random.uniform(k2, (size,), jnp.float32, -bound, bound)
    context_vector = jax.random.uniform(k3, (num_head, head_size, 1),
                                        jnp.float32, -1.0, 1.0)
    x = jax.random.normal(k4, (B, L, size), jnp.float32)

    ref = _reference_multihead(x, weight, bias, context_vector, num_head)

    # Default path: bf16 matmul inputs, f32 softmax/accumulate, 2-step grid.
    out = jax.block_until_ready(
        context_attention(x, weight, bias, context_vector, num_head))
    assert out.shape == (B, size)
    assert jnp.allclose(out, ref, rtol=5e-2, atol=5e-2), "bf16 multi-head mismatch"

    # Full-f32 parity path.
    out_f32 = jax.block_until_ready(
        context_attention(x, weight, bias, context_vector, num_head,
                          compute_dtype=jnp.float32))
    assert jnp.allclose(out_f32, ref, rtol=1e-2, atol=1e-2), "f32 multi-head mismatch"

    # Non-dividing batch: exercises the pad-and-slice path (no tb=1 fallback).
    B3 = 13
    x3 = jax.random.normal(k5, (B3, L, size), jnp.float32)
    out3 = jax.block_until_ready(
        context_attention(x3, weight, bias, context_vector, num_head,
                          block_batch=8, compute_dtype=jnp.float32))
    ref3 = _reference_multihead(x3, weight, bias, context_vector, num_head)
    assert out3.shape == (B3, size)
    assert jnp.allclose(out3, ref3, rtol=1e-2, atol=1e-2), "padded multi-head mismatch"

    # --- head_size == 1 path (e.g. result_for_tempo_attention) ---
    B2, L2, size2 = 4, 8, 16
    num_head2 = size2                       # head_size == 1
    bound2 = 1.0 / (size2 ** 0.5)
    weight2 = jax.random.uniform(k6, (size2, size2), jnp.float32, -bound2, bound2)
    bias2 = jax.random.uniform(k7, (size2,), jnp.float32, -bound2, bound2)
    context_vector2 = jax.random.uniform(key, (num_head2, 1, 1),
                                         jnp.float32, -1.0, 1.0)  # unused by branch
    x2 = jax.random.normal(k8, (B2, L2, size2), jnp.float32)

    ref2 = _reference_h1(x2, weight2, bias2)
    out2 = jax.block_until_ready(
        context_attention(x2, weight2, bias2, context_vector2, num_head2))
    assert out2.shape == (B2, size2)
    assert jnp.allclose(out2, ref2, rtol=5e-2, atol=5e-2), "bf16 head_size==1 mismatch"

    out2_f32 = jax.block_until_ready(
        context_attention(x2, weight2, bias2, context_vector2, num_head2,
                          compute_dtype=jnp.float32))
    assert jnp.allclose(out2_f32, ref2, rtol=1e-2, atol=1e-2), "f32 head_size==1 mismatch"

    print("KERNEL_OK")
</pallas_src>

<mosaic_0001>
module attributes {stable_mosaic.version = 11 : i64} {
  func.func @_context_attention_mh_kernel(%arg0: i32, %arg1: memref<8x8x32xbf16, #tpu.memory_space<vmem>>, %arg2: memref<32x32xbf16, #tpu.memory_space<vmem>>, %arg3: memref<1x32xf32, #tpu.memory_space<vmem>>, %arg4: memref<32x4xf32, #tpu.memory_space<vmem>>, %arg5: memref<4x32xf32, #tpu.memory_space<vmem>>, %arg6: memref<8x32xf32, #tpu.memory_space<vmem>>) attributes {dimension_semantics = [#tpu.dimension_semantics<parallel>], iteration_bounds = array<i64: 2>, scalar_prefetch = 0 : i64, scratch_operands = 0 : i64, tpu.core_type = #tpu.core_type<tc>, window_params = [{transform_indices = @transform_0, window_bounds = array<i64: 8, 8, 32>}, {pipeline_mode = #tpu.pipeline_mode<synchronous>, transform_indices = @transform_1, window_bounds = array<i64: 32, 32>}, {pipeline_mode = #tpu.pipeline_mode<synchronous>, transform_indices = @transform_2, window_bounds = array<i64: 1, 32>}, {pipeline_mode = #tpu.pipeline_mode<synchronous>, transform_indices = @transform_3, window_bounds = array<i64: 32, 4>}, {pipeline_mode = #tpu.pipeline_mode<synchronous>, transform_indices = @transform_4, window_bounds = array<i64: 4, 32>}, {transform_indices = @transform_5, window_bounds = array<i64: 8, 32>}]} {
    %c0 = arith.constant 0 : index
    %c0_0 = arith.constant 0 : index
    %c0_1 = arith.constant 0 : index
    %0 = vector.load %arg1[%c0, %c0_0, %c0_1] : memref<8x8x32xbf16, #tpu.memory_space<vmem>>, vector<8x8x32xbf16>
    %1 = vector.shape_cast %0 : vector<8x8x32xbf16> to vector<64x32xbf16>
    %c0_2 = arith.constant 0 : index
    %c0_3 = arith.constant 0 : index
    %2 = vector.load %arg2[%c0_2, %c0_3] : memref<32x32xbf16, #tpu.memory_space<vmem>>, vector<32x32xbf16>
    %cst = arith.constant dense<0.000000e+00> : vector<64x32xf32>
    %3 = tpu.matmul %1, %2, %cst {dimension_numbers = #tpu.dot_dimension_numbers<[1], [0], [0], [1], [0, 0, 1, 1], [], []>} : vector<64x32xbf16>, vector<32x32xbf16>, vector<64x32xf32> -> vector<64x32xf32>
    %c0_4 = arith.constant 0 : index
    %c0_5 = arith.constant 0 : index
    %4 = vector.load %arg3[%c0_4, %c0_5] : memref<1x32xf32, #tpu.memory_space<vmem>>, vector<1x32xf32>
    %5 = vector.broadcast %4 : vector<1x32xf32> to vector<64x32xf32>
    %6 = arith.addf %3, %5 : vector<64x32xf32>
    %7 = math.tanh %6 : vector<64x32xf32>
    %c0_6 = arith.constant 0 : index
    %c0_7 = arith.constant 0 : index
    %8 = vector.load %arg4[%c0_6, %c0_7] : memref<32x4xf32, #tpu.memory_space<vmem>>, vector<32x4xf32>
    %cst_8 = arith.constant dense<0.000000e+00> : vector<64x4xf32>
    %9 = tpu.matmul %7, %8, %cst_8 {dimension_numbers = #tpu.dot_dimension_numbers<[1], [0], [0], [1], [0, 0, 1, 1], [], []>} : vector<64x32xf32>, vector<32x4xf32>, vector<64x4xf32> -> vector<64x4xf32>
    %10 = vector.shape_cast %9 : vector<64x4xf32> to vector<8x8x4xf32>
    %cst_9 = arith.constant dense<0xFF800000> : vector<8x4xf32>
    %11 = vector.multi_reduction <maximumf>, %10, %cst_9 [1] : vector<8x8x4xf32> to vector<8x4xf32>
    %12 = vector.shape_cast %11 : vector<8x4xf32> to vector<8x1x4xf32>
    %13 = vector.broadcast %12 : vector<8x1x4xf32> to vector<8x8x4xf32>
    %14 = arith.subf %10, %13 : vector<8x8x4xf32>
    %15 = math.exp %14 : vector<8x8x4xf32>
    %cst_10 = arith.constant dense<0.000000e+00> : vector<8x4xf32>
    %16 = vector.multi_reduction <add>, %15, %cst_10 [1] : vector<8x8x4xf32> to vector<8x4xf32>
    %17 = vector.shape_cast %16 : vector<8x4xf32> to vector<8x1x4xf32>
    %18 = tpu.reciprocal %17 {approx = true} : vector<8x1x4xf32> -> vector<8x1x4xf32>
    %19 = vector.broadcast %18 : vector<8x1x4xf32> to vector<8x8x4xf32>
    %20 = arith.mulf %15, %19 : vector<8x8x4xf32>
    %21 = vector.shape_cast %20 : vector<8x8x4xf32> to vector<64x4xf32>
    %c0_11 = arith.constant 0 : index
    %c0_12 = arith.constant 0 : index
    %22 = vector.load %arg5[%c0_11, %c0_12] : memref<4x32xf32, #tpu.memory_space<vmem>>, vector<4x32xf32>
    %cst_13 = arith.constant dense<0.000000e+00> : vector<64x32xf32>
    %23 = tpu.matmul %21, %22, %cst_13 {dimension_numbers = #tpu.dot_dimension_numbers<[1], [0], [0], [1], [0, 0, 1, 1], [], []>} : vector<64x4xf32>, vector<4x32xf32>, vector<64x32xf32> -> vector<64x32xf32>
    %24 = vector.shape_cast %23 : vector<64x32xf32> to vector<8x8x32xf32>
    %25 = arith.extf %0 : vector<8x8x32xbf16> to vector<8x8x32xf32>
    %26 = arith.mulf %24, %25 : vector<8x8x32xf32>
    %cst_14 = arith.constant dense<0.000000e+00> : vector<8x32xf32>
    %27 = vector.multi_reduction <add>, %26, %cst_14 [1] : vector<8x8x32xf32> to vector<8x32xf32>
    %c0_15 = arith.constant 0 : index
    %c0_16 = arith.constant 0 : index
    %28 = vector.load %arg6[%c0_15, %c0_16] : memref<8x32xf32, #tpu.memory_space<vmem>>, vector<8x32xf32>
    tpu.vector_store %arg6[%c0_15, %c0_16], %27 {strides = array<i32>} : memref<8x32xf32, #tpu.memory_space<vmem>>, vector<8x32xf32>,
    return
  }
  func.func @transform_0(%arg0: i32) -> (i32, i32, i32) {
    %c0_i32 = arith.constant 0 : i32
    %c0_i32_0 = arith.constant 0 : i32
    %c0_i32_1 = arith.constant 0 : i32
    return %arg0, %c0_i32, %c0_i32_0 : i32, i32, i32
  }
  func.func @transform_1(%arg0: i32) -> (i32, i32) {
    %c0_i32 = arith.constant 0 : i32
    %c0_i32_0 = arith.constant 0 : i32
    %c0_i32_1 = arith.constant 0 : i32
    return %c0_i32, %c0_i32_0 : i32, i32
  }
  func.func @transform_2(%arg0: i32) -> (i32, i32) {
    %c0_i32 = arith.constant 0 : i32
    %c0_i32_0 = arith.constant 0 : i32
    %c0_i32_1 = arith.constant 0 : i32
    return %c0_i32, %c0_i32_0 : i32, i32
  }
  func.func @transform_3(%arg0: i32) -> (i32, i32) {
    %c0_i32 = arith.constant 0 : i32
    %c0_i32_0 = arith.constant 0 : i32
    %c0_i32_1 = arith.constant 0 : i32
    return %c0_i32, %c0_i32_0 : i32, i32
  }
  func.func @transform_4(%arg0: i32) -> (i32, i32) {
    %c0_i32 = arith.constant 0 : i32
    %c0_i32_0 = arith.constant 0 : i32
    %c0_i32_1 = arith.constant 0 : i32
    return %c0_i32, %c0_i32_0 : i32, i32
  }
  func.func @transform_5(%arg0: i32) -> (i32, i32) {
    %c0_i32 = arith.constant 0 : i32
    %c0_i32_0 = arith.constant 0 : i32
    return %arg0, %c0_i32 : i32, i32
  }
}

</mosaic_0001>

<bundles_post_ra>
// kernel: tpu_custom_call.1
= control target key start
LH: loop header
LB: loop body
LE: loop exit
PB: predicated region body
PF: predicated region fallthrough
CT: control target
= control target key end

     0   :  { %10 = vsyncpa [#allocation3], 0  ;;  %s1625_s0 = inlined_call_operand.hbm [shape: bf16[16,8,32], index: 0, kind: input, shape index: {}]   ;;  %s1626_s1 = inlined_call_operand.vmem [shape: bf16[32,32], index: 1, kind: input, shape index: {}]   ;;  %s1627_s2 = inlined_call_operand.vmem [shape: f32[1,32], index: 2, kind: input, shape index: {}]   ;;  %s1628_s3 = inlined_call_operand.vmem [shape: f32[32,4], index: 3, kind: input, shape index: {}]   ;;  %s1629_s4 = inlined_call_operand.vmem [shape: f32[4,32], index: 4, kind: input, shape index: {}]   ;;  %s1630_s5 = inlined_call_operand.hbm [shape: f32[16,32], index: 5, kind: output, shape index: {}]  }
   0x1   :  { %12 = vsyncpa [#allocation3 + $0x1], 0 }
   0x2   :  { %13 = vsyncpa [#allocation4], 0 }
   0x3   :  { %15 = vsyncpa [#allocation4 + $0x1], 0  ;;  %s1347_s18 = smov 0   ;;  %s1349_s19 = smov 0  }
   0x4   :  { %s1351_s20 = smov 0   ;;  %s1353_s21 = smov 0  }
   0x5 LB: > { %s1368_s22 = sadd.s32 4294967295, %s1311_s21   ;;  %s982_s23 = sadd.s32 4294967294, %s1311_s21   ;;  %s1311_s21 = sphi %s1353_s21, %s1643_s21   ;;  %s1307_s20 = sphi %s1351_s20, %s1642_s20   ;;  %s1303_s19 = sphi %s1349_s19, %s1641_s19   ;;  %s1299_s18 = sphi %s1347_s18, %s1640_s18  }
   0x6   : > { %s1372_s24 = sadd.s32 1, %s1311_s21   ;;  %s28_s25 = sadd.s32 1, %s1307_s20 }
   0x7   : > { %s25_s26 = ssub.s32 %s1311_s21, %s1372_s24  ;;  %p35_p0 = scmp.ne.s32.totalorder %s1307_s20, %s1303_s19 }
   0x8   : > { %p26_p1 = scmp.eq.s32.totalorder %s25_s26, 0  ;;  %p36_p2 = scmp.eq.s32.totalorder %s1311_s21, 0 }
   0x9   : > { %p41_p3 = scmp.ne.s32.totalorder %s1303_s19, %s1299_s18  ;;  %p42_p4 = scmp.eq.s32.totalorder %s1368_s22, 0 }
   0xa   : > { %s1384_s27 = scalar_select %p26_p1, %s1307_s20, %s28_s25  }
   0xb   : > { %p1386_p5 = por %p36_p2, %p35_p0  ;;  %p1390_p6 = por %p42_p4, %p41_p3 }
   0xc   : > { %p149_p7 = scmp.eq.s32.totalorder %s1368_s22, 1  ;;  %p155_p8 = scmp.eq.s32.totalorder %s982_s23, 1 }
   0xd   : > { %p1121_p10 = scmp.lt.s32.totalorder %s1311_s21, 2  ;;  %s187_s7 = sand.u32 1, %s1307_s20  }
   0xe   : > { %p1397_p11 = por %p149_p7, %p35_p0  ;;  %p1401_p12 = por %p155_p8, %p41_p3 }
   0xf   : > { %s1023_s8 = sshll.u32 %s1311_s21, 9  ;;  %s985_s9 = sshll.u32 %s187_s7, 5 }
  0x10   : > { %s1634_s30 = scalar_select %p1397_p11, 1, 0 }
  0x11   : > { %s1635_s6 = scalar_select %p1401_p12, 1, 0 }
  0x12   : > { %s1410_s12 = scalar_lea.hbm %s1625_s0, %s1023_s8  ;;  %s191_s13 = scalar_lea.vmem [#allocation2], %s985_s9 }
  0x13   : > { %s198_s14 = sshll.u32 %s191_s13, 4  ;;  %p1414_p13 = pnand %p1121_p10, %p1386_p5  ;;  %s1418_s14 = int_to_ptr.vmem [resolvable:$true] %s198_s14 }
  0x14   : > { %s1420_s16 = scalar_lea.sflag [#allocation3], %s187_s7  ;;  %s1215_s17 = scalar_lea.hbm %s1410_s12, 512 }
  0x15   : > { %p1216_p0 = scmp.ne.s32.totalorder %s1410_s12, %s1215_s17  ;;  %p1217_p1 = pneg %p1414_p13 }
  0x16   : > { %s1220_s26 = scalar_lea.hbm %s1625_s0, 1024  ;;  %p1221_p4 = scmp.lt.u32.totalorder %s1410_s12, %s1625_s0 }
  0x17   : > { %p1218_p2 = pnand %p1217_p1, %p1216_p0  ;;  %p1222_p5 = scmp.lt.u32.totalorder %s1220_s26, %s1215_s17 }
  0x18   : > { %p1224_p8 = scmp.lt.u32.totalorder %s1215_s17, %s1410_s12 }
  0x19   : > { %p1219_p3 = pneg %p1218_p2  ;;  %p1223_p7 = por %p1222_p5, %p1221_p4 }
  0x1b   : > { %p1225_p10 = por %p1224_p8, %p1223_p7 }
  0x1d   : > { %p1226_p9 = pnand %p1225_p10, %p1219_p3 }
  0x1f   : > { %1229 = shalt.err (!%p1226_p9)
}
  0x20   : > { %s1230_s7 = scalar_lea.vmem %s1418_s14, 512  ;;  %s1313_s9 = smov [#allocation2]  }
  0x21   : > { %p1231_p0 = scmp.ne.s32.totalorder %s1418_s14, %s1230_s7  ;;  %s1235_s10 = sshll.u32 %s1313_s9, 4  ;;  %s1236_s10 = int_to_ptr.vmem [resolvable:$false] %s1235_s10 }
  0x22   : > { %s1237_s11 = scalar_lea.vmem %s1236_s10, 1024  ;;  %p1238_p11 = scmp.lt.s32.totalorder %s1418_s14, %s1236_s10 }
  0x23   : > { %p1233_p2 = pnand %p1231_p0, %p1217_p1  ;;  %p1239_p4 = scmp.lt.s32.totalorder %s1237_s11, %s1230_s7 }
  0x25   : > { %p1234_p12 = pneg %p1233_p2  ;;  %p1240_p5 = por %p1239_p4, %p1238_p11 }
  0x27   : > { %p1241_p7 = pnand %p1240_p5, %p1234_p12 }
  0x29   : > { %1244 = shalt.err (!%p1241_p7)
}
  0x2a   : > { %s1314_s13 = smov 64   ;;  %s1315_s17 = smov 4  }
  0x2b   : > { %1116 = dma.hbm_to_vmem [thread:$0]  (!%p1414_p13), %s1410_s12, 512, %s1418_s14, %s1420_s16, %s1314_s13, %s1314_s13, %s1315_s17  }
  0x2c   : > { %p988_p9 = scmp.ge.s32.totalorder %s1311_s21, 1  ;;  %p206_p1 = scmp.lt.s32.totalorder %s1311_s21, 3 }
  0x2e   : > { %p207_p3 = pnand %p988_p9, %p206_p1 }
  0x2f   : > { %s1451_s23 = sand.u32 (!%p207_p3), 1, %s1303_s19  }
  0x30   : > { %210 = sbr.rel (%p207_p3) target bundleno = 819 (0x333), region = 40  ;;  %s989_s25 = sshll.u32 (!%p207_p3), %s1451_s23, 5 }
  0x31   : > { %s213_s26 = scalar_lea.sflag (!%p207_p3), [#allocation3], %s1451_s23  ;;  %s216_s28 = scalar_lea.vmem (!%p207_p3), [#allocation2], %s989_s25 }
  0x37   : > { %1290 = dma.done.wait (%p1390_p6), %s213_s26, 512  }
  0x38   : > { %1292 = vsyncadd (%p1390_p6), %s213_s26, 4294966784  ;;  %v1157_v0 = vld [vmem:[%s1626_s1] sm:$0xff]   ;;  %v1158_v1 = vld [vmem:[%s1626_s1 + $0x8] sm:$0xff]   ;;  %vm296_vm0 = vcmask 261120   ;;  %vm693_vm1 = vcmask 1043456   ;;  %vm515_vm2 = vcmask 31744  }
  0x39   : > { %1051 = vmatprep.subr.bf16.mxu0 %v1157_v0  ;;  %1105 = vmatprep.subr.bf16.mxu1 %v1157_v0  ;;  %v1465_v2 = vld [vmem:[%s216_s28] sm:$0xff]   ;;  %v1467_v3 = vld [vmem:[%s216_s28 + $0x10] sm:$0xff]   ;;  %v1469_v4 = vld [vmem:[%s216_s28 + $0x8] sm:$0xff]   ;;  %vm882_vm3 = vcmask 1041409   ;;  %vm884_vm4 = vcmask 1042434   ;;  %vm886_vm5 = vcmask 1043459  }
  0x3a   : > { %1052 = vmatpush3.bf16.msra.mxu0 %v1157_v0  ;;  %1107 = vmatpush3.bf16.msra.mxu1 %v1157_v0  ;;  %v1471_v5 = vld [vmem:[%s216_s28 + $0x18] sm:$0xff]   ;;  %v382_v6 = vld [vmem:[%s1628_s3] sm:$0xff]  ;;  %v383_v7 = vld [vmem:[%s1628_s3 + $0x8] sm:$0xff]  ;;  %vm888_vm6 = vcmask 1044484   ;;  %s990_s12 = sshll.u32 %s1451_s23, 3  ;;  %vm890_vm7 = vcmask 1045509  }
  0x3b   : > { %1053 = vmatprep.subr.bf16.mxu0 %v1158_v1  ;;  %1106 = vmatprep.subr.bf16.mxu1 %v1158_v1  ;;  %v1097_v8 = vpack.c.bf16 %v383_v7, %v382_v6  ;;  %v384_v9 = vld [vmem:[%s1628_s3 + $0x10] sm:$0xff]  ;;  %v385_v10 = vld [vmem:[%s1628_s3 + $0x18] sm:$0xff]  ;;  %v991_v12 = vld [vmem:[%s1627_s2] ss:$0 sm:$0xff]  ;;  %vm892_vm8 = vcmask 1046534   ;;  %s1020_s14 = sshll.u32 %s1368_s22, 7 }
  0x3c   : > { %1055 = vmatprep.mubr.msk.bf16.mxu0 %vm296_vm0, %v1465_v2  ;;  %1059 = vmatprep.mubr.msk.bf16.mxu1 %vm296_vm0, %v1467_v3  ;;  %v1101_v11 = vpack.c.bf16 %v385_v10, %v384_v9  ;;  %v668_v37 = vld [vmem:[%s1629_s4] sm:$0xf]  ;;  %s242_s16 = scalar_lea.vmem [#allocation5], %s990_s12  ;;  %vm894_vm9 = vcmask 1047559   ;;  %s1580_s9 = scalar_lea.hbm %s1630_s5, %s1020_s14 }
  0x3d   : > { %s912_s29 = sshll.u32 %s242_s16, 4  ;;  %s899_s22 = scalar_lea.sflag [#allocation4], %s1451_s23  ;;  %s1582_s29 = int_to_ptr.vmem [resolvable:$true] %s912_s29 }
  0x3e   : > { %1054 = vmatpush3.bf16.msra.mxu0 %v1158_v1  ;;  %1108 = vmatpush3.bf16.msra.mxu1 %v1158_v1  ;;  %s1245_s10 = scalar_lea.vmem %s1582_s29, 128  ;;  %p1637_p11 = scmp.ne.s32.totalorder %s1634_s30, 0 }
  0x3f   : > { %1098 = vmatprep.subr.bf16.mxu1 %v1097_v8  ;;  %1083 = vmatprep.subr.msk.mxu0 %vm693_vm1, %v668_v37  ;;  %p1246_p6 = scmp.ne.s32.totalorder %s1582_s29, %s1245_s10  ;;  %s1316_s11 = smov [#allocation5]  }
  0x40   : > { %s1249_s13 = sshll.u32 %s1316_s11, 4  ;;  %s1250_s13 = int_to_ptr.vmem [resolvable:$false] %s1249_s13 }
  0x41   : > { %1056 = vmatmul.mubr.msk.bf16.vlgmr.msra.gmra.mrb[0].mxu0 %vm296_vm0, %v1469_v4  ;;  %1060 = vmatmul.mubr.msk.bf16.vlgmr.msra.gmra.mrb[0].mxu1 %vm296_vm0, %v1471_v5  ;;  %p1247_p12 = pnand %p1246_p6, %p1637_p11  ;;  %s1251_s17 = scalar_lea.vmem %s1250_s13, 256 }
  0x42   : > { %1100 = vmatpush3.bf16.msra.mxu1 %v1097_v8  ;;  %1084 = vmatpush3.msk.msra.mxu0 %vm693_vm1, %v668_v37  ;;  %p1252_p8 = scmp.lt.s32.totalorder %s1582_s29, %s1250_s13  ;;  %p1253_p10 = scmp.lt.s32.totalorder %s1251_s17, %s1245_s10 }
  0x43   : > { %1102 = vmatprep.subr.bf16.mxu1 %v1101_v11  ;;  %p1248_p13 = pneg %p1247_p12 }
  0x44   : > { %p1254_p0 = por %p1253_p10, %p1252_p8 }
  0x46   : > { %1104 = vmatpush3.bf16.msra.mxu1 %v1101_v11  ;;  %p1255_p2 = pnand %p1254_p0, %p1248_p13 }
 0x114   : > { %v1057_v13 = vpop.f32.mrb[0].mxu0  ;;  %v1061_v14 = vpop.f32.mrb[0].mxu1 }
 0x115   : > { %v343_v15 = vpop.f32.mrb[1].mxu0  ;;  %v359_v16 = vpop.f32.mrb[1].mxu1  ;;  %v352_v20 = vadd.f32 %v1057_v13, %v991_v12  ;;  %v368_v27 = vadd.f32 %v1061_v14, %v991_v12 }
 0x116   : > { %v344_v17 = vadd.f32 %v991_v12, %v343_v15  ;;  %v1058_v18 = vpop.f32.mrb[2].mxu0  ;;  %v1062_v19 = vpop.f32.mrb[2].mxu1  ;;  %v360_v24 = vadd.f32 %v991_v12, %v359_v16 }
 0x117   : > { %v346_v21 = vpop.f32.mrb[3].mxu0  ;;  %v362_v22 = vpop.f32.mrb[3].mxu1  ;;  %v355_v25 = vadd.f32 %v1058_v18, %v991_v12  ;;  %v371_v29 = vadd.f32 %v1062_v19, %v991_v12 }
 0x118   : > { %1167 = vtanh.f32 %v344_v17  ;;  %v347_v23 = vadd.f32 %v991_v12, %v346_v21  ;;  %v363_v26 = vadd.f32 %v991_v12, %v362_v22 }
 0x11a   : > { %1169 = vtanh.f32 %v347_v23 }
 0x11b   : > { %1171 = vtanh.f32 %v352_v20 }
 0x11c   : > { %1173 = vtanh.f32 %v360_v24 }
 0x11d   : > { %1175 = vtanh.f32 %v355_v25 }
 0x11e   : > { %1177 = vtanh.f32 %v363_v26 }
 0x11f   : > { %1179 = vtanh.f32 %v368_v27 }
 0x120   : > { %1181 = vtanh.f32 %v371_v29 }
 0x122   : > { %v1168_v28 = vpop.eup %1167 }
 0x123   : > { %1071 = vmatprep.mubr.msk.f32.mxu1 %vm296_vm0, %v1168_v28 }
 0x124   : > { %v1170_v30 = vpop.eup %1169 }
 0x125   : > { %v1172_v31 = vpop.eup %1171  ;;  %1072 = vmatmul.mubr.msk.f32.vlgmr.msra.gmra.mrb[4].mxu1 %vm296_vm0, %v1170_v30 }
 0x126   : > { %1074 = vmatprep.mubr.msk.f32.mxu1 %vm296_vm0, %v1172_v31  ;;  %v1174_v32 = vpop.eup %1173 }
 0x127   : > { %v1176_v33 = vpop.eup %1175 }
 0x128   : > { %v1178_v34 = vpop.eup %1177 }
 0x129   : > { %1075 = vmatmul.mubr.msk.f32.gmra.mrb[6].mxu1 %vm296_vm0, %v1176_v33  ;;  %v1180_v35 = vpop.eup %1179 }
 0x12a   : > { %1077 = vmatprep.mubr.msk.f32.mxu1 %vm296_vm0, %v1174_v32  ;;  %v1182_v36 = vpop.eup %1181 }
 0x12d   : > { %1078 = vmatmul.mubr.msk.f32.gmra.mrb[8].mxu1 %vm296_vm0, %v1178_v34 }
 0x12e   : > { %1080 = vmatprep.mubr.msk.f32.mxu1 %vm296_vm0, %v1180_v35 }
 0x131   : > { %1081 = vmatmul.mubr.msk.f32.gmra.mrb[10].mxu1 %vm296_vm0, %v1182_v36 }
 0x1f8   : > { %v1073_v38 = vpop.f32.mrb[4].mxu1 }
 0x1f9   : > { %v523_v39 = vsel %vm515_vm2, %v1073_v38, -inf  ;;  %v476_v40 = vpop.f32.mrb[5].mxu1 }
 0x1fa   : > { %v524_v41 = vrot.slane %v523_v39, 4  ;;  %v516_v42 = vsel %vm515_vm2, %v476_v40, -inf }
 0x1fb   : > { %v517_v43 = vrot.slane %v516_v42, 4 }
 0x1fc   : > { %v525_v44 = vmax.f32 %v523_v39, %v524_v41  ;;  %v1076_v45 = vpop.f32.mrb[6].mxu1 }
 0x1fd   : > { %v518_v46 = vmax.f32 %v516_v42, %v517_v43  ;;  %v537_v47 = vsel %vm515_vm2, %v1076_v45, -inf  ;;  %v486_v48 = vpop.f32.mrb[7].mxu1 }
 0x1fe   : > { %v526_v49 = vrot.slane %v525_v44, 2  ;;  %v538_v50 = vrot.slane %v537_v47, 4  ;;  %v530_v51 = vsel %vm515_vm2, %v486_v48, -inf }
 0x1ff   : > { %v519_v52 = vrot.slane %v518_v46, 2  ;;  %v531_v53 = vrot.slane %v530_v51, 4 }
 0x200   : > { %v527_v54 = vmax.f32 %v525_v44, %v526_v49  ;;  %v539_v55 = vmax.f32 %v537_v47, %v538_v50  ;;  %v1079_v56 = vpop.f32.mrb[8].mxu1 }
 0x201   : > { %v520_v57 = vmax.f32 %v518_v46, %v519_v52  ;;  %v532_v58 = vmax.f32 %v530_v51, %v531_v53  ;;  %v551_v59 = vsel %vm515_vm2, %v1079_v56, -inf  ;;  %v496_v60 = vpop.f32.mrb[9].mxu1 }
 0x202   : > { %v528_v61 = vrot.slane %v527_v54, 1  ;;  %v540_v62 = vrot.slane %v539_v55, 2  ;;  %v552_v63 = vrot.slane %v551_v59, 4  ;;  %v544_v0 = vsel %vm515_vm2, %v496_v60, -inf }
 0x203   : > { %v521_v1 = vrot.slane %v520_v57, 1  ;;  %v533_v6 = vrot.slane %v532_v58, 2  ;;  %v545_v7 = vrot.slane %v544_v0, 4 }
 0x204   : > { %v529_v8 = vmax.f32 %v527_v54, %v528_v61  ;;  %v541_v9 = vmax.f32 %v539_v55, %v540_v62  ;;  %v553_v10 = vmax.f32 %v551_v59, %v552_v63  ;;  %v1082_v11 = vpop.f32.mrb[10].mxu1 }
 0x205   : > { %v522_v12 = vmax.f32 %v520_v57, %v521_v1  ;;  %v534_v13 = vmax.f32 %v532_v58, %v533_v6  ;;  %v546_v14 = vmax.f32 %v544_v0, %v545_v7  ;;  %v565_v15 = vsel %vm515_vm2, %v1082_v11, -inf  ;;  %v506_v16 = vpop.f32.mrb[11].mxu1 }
 0x206   : > { %v573_v17 = vsub.f32 %v1073_v38, %v529_v8  ;;  %v542_v18 = vrot.slane %v541_v9, 1  ;;  %v554_v19 = vrot.slane %v553_v10, 2  ;;  %v566_v20 = vrot.slane %v565_v15, 4 }
 0x207   : > { %v572_v21 = vsub.f32 %v476_v40, %v522_v12  ;;  %v535_v22 = vrot.slane %v534_v13, 1  ;;  %v547_v23 = vrot.slane %v546_v14, 2  ;;  %v558_v24 = vsel %vm515_vm2, %v506_v16, -inf }
 0x208   : > { %v582_v25 = vmul.f32 1.442695, %v573_v17  ;;  %v543_v26 = vmax.f32 %v541_v9, %v542_v18  ;;  %v555_v27 = vmax.f32 %v553_v10, %v554_v19  ;;  %v567_v28 = vmax.f32 %v565_v15, %v566_v20 }
 0x209   : > { %v580_v29 = vmul.f32 1.442695, %v572_v21  ;;  %v536_v30 = vmax.f32 %v534_v13, %v535_v22  ;;  %v548_v31 = vmax.f32 %v546_v14, %v547_v23  ;;  %v559_v32 = vrot.slane %v558_v24, 4 }
 0x20a   : > { %1183 = vpow2.f32 %v582_v25  ;;  %v575_v33 = vsub.f32 %v1076_v45, %v543_v26  ;;  %v556_v34 = vrot.slane %v555_v27, 1  ;;  %v568_v35 = vrot.slane %v567_v28, 2 }
 0x20b   : > { %1185 = vpow2.f32 %v580_v29  ;;  %v574_v36 = vsub.f32 %v486_v48, %v536_v30  ;;  %v549_v37 = vrot.slane %v548_v31, 1  ;;  %v560_v38 = vmax.f32 %v558_v24, %v559_v32 }
 0x20c   : > { %v586_v39 = vmul.f32 1.442695, %v575_v33  ;;  %v557_v40 = vmax.f32 %v555_v27, %v556_v34  ;;  %v569_v41 = vmax.f32 %v567_v28, %v568_v35 }
 0x20d   : > { %v584_v42 = vmul.f32 1.442695, %v574_v36  ;;  %v550_v43 = vmax.f32 %v548_v31, %v549_v37  ;;  %v561_v44 = vrot.slane %v560_v38, 2 }
 0x20e   : > { %1187 = vpow2.f32 %v586_v39  ;;  %v577_v46 = vsub.f32 %v1079_v56, %v557_v40  ;;  %v570_v47 = vrot.slane %v569_v41, 1 }
 0x20f   : > { %1189 = vpow2.f32 %v584_v42  ;;  %v576_v49 = vsub.f32 %v496_v60, %v550_v43  ;;  %v562_v50 = vmax.f32 %v560_v38, %v561_v44 }
 0x210   : > { %v590_v51 = vmul.f32 1.442695, %v577_v46  ;;  %v571_v45 = vmax.f32 %v569_v41, %v570_v47 }
 0x211   : > { %v588_v52 = vmul.f32 1.442695, %v576_v49  ;;  %v563_v53 = vrot.slane %v562_v50, 1 }
 0x212   : > { %1191 = vpow2.f32 %v590_v51  ;;  %v579_v48 = vsub.f32 %v1082_v11, %v571_v45 }
 0x213   : > { %1193 = vpow2.f32 %v588_v52  ;;  %v564_v54 = vmax.f32 %v562_v50, %v563_v53 }
 0x214   : > { %v1515_v55 = vpop.eup %1183  ;;  %v594_v57 = vmul.f32 1.442695, %v579_v48 }
 0x215   : > { %v1517_v58 = vpop.eup %1185  ;;  %v603_v56 = vsel %vm515_vm2, %v1515_v55, 0.0  ;;  %v578_v59 = vsub.f32 %v506_v16, %v564_v54 }
 0x216   : > { %v604_v61 = vrot.slane %v603_v56, 4  ;;  %v596_v60 = vsel %vm515_vm2, %v1517_v58, 0.0  ;;  %1195 = vpow2.f32 %v594_v57 }
 0x217   : > { %v597_v62 = vrot.slane %v596_v60, 4  ;;  %v592_v63 = vmul.f32 1.442695, %v578_v59 }
 0x218   : > { %v1523_v0 = vpop.eup %1187  ;;  %v605_v1 = vadd.f32 %v604_v61, %v603_v56 }
 0x219   : > { %v1525_v6 = vpop.eup %1189  ;;  %v598_v7 = vadd.f32 %v597_v62, %v596_v60  ;;  %v617_v8 = vsel %vm515_vm2, %v1523_v0, 0.0  ;;  %1197 = vpow2.f32 %v592_v63 }
 0x21a   : > { %v606_v9 = vrot.slane %v605_v1, 2  ;;  %v618_v10 = vrot.slane %v617_v8, 4  ;;  %v610_v11 = vsel %vm515_vm2, %v1525_v6, 0.0 }
 0x21b   : > { %v599_v12 = vrot.slane %v598_v7, 2  ;;  %v611_v13 = vrot.slane %v610_v11, 4 }
 0x21c   : > { %v1531_v14 = vpop.eup %1191  ;;  %v607_v15 = vadd.f32 %v606_v9, %v605_v1  ;;  %v619_v16 = vadd.f32 %v618_v10, %v617_v8 }
 0x21d   : > { %v1533_v17 = vpop.eup %1193  ;;  %v600_v18 = vadd.f32 %v599_v12, %v598_v7  ;;  %v612_v19 = vadd.f32 %v611_v13, %v610_v11  ;;  %v631_v20 = vsel %vm515_vm2, %v1531_v14, 0.0 }
 0x21e   : > { %v608_v21 = vrot.slane %v607_v15, 1  ;;  %v620_v22 = vrot.slane %v619_v16, 2  ;;  %v632_v23 = vrot.slane %v631_v20, 4  ;;  %v624_v24 = vsel %vm515_vm2, %v1533_v17, 0.0 }
 0x21f   : > { %v601_v25 = vrot.slane %v600_v18, 1  ;;  %v613_v26 = vrot.slane %v612_v19, 2  ;;  %v625_v27 = vrot.slane %v624_v24, 4 }
 0x220   : > { %v1539_v28 = vpop.eup %1195  ;;  %v609_v29 = vadd.f32 %v608_v21, %v607_v15  ;;  %v621_v30 = vadd.f32 %v620_v22, %v619_v16  ;;  %v633_v31 = vadd.f32 %v632_v23, %v631_v20  ;;  %v802_v21 = vunpack.c.l.bf16 %v1465_v2 }
 0x221   : > { %v602_v32 = vadd.f32 %v601_v25, %v600_v18  ;;  %v614_v33 = vadd.f32 %v613_v26, %v612_v19  ;;  %v626_v34 = vadd.f32 %v625_v27, %v624_v24  ;;  %v645_v35 = vsel %vm515_vm2, %v1539_v28, 0.0 }
 0x222   : > { %1199 = vrcp.f32 %v609_v29  ;;  %v622_v36 = vrot.slane %v621_v30, 1  ;;  %v634_v37 = vrot.slane %v633_v31, 2  ;;  %v646_v38 = vrot.slane %v645_v35, 4 }
 0x223   : > { %v1198_v39 = vpop.eup %1197  ;;  %v615_v40 = vrot.slane %v614_v33, 1  ;;  %v627_v41 = vrot.slane %v626_v34, 2  ;;  %1201 = vrcp.f32 %v602_v32  ;;  %v805_v23 = vunpack.c.h.bf16 %v1469_v4 }
 0x224   : > { %v623_v42 = vadd.f32 %v622_v36, %v621_v30  ;;  %v635_v43 = vadd.f32 %v634_v37, %v633_v31  ;;  %v647_v44 = vadd.f32 %v646_v38, %v645_v35  ;;  %v638_v46 = vsel %vm515_vm2, %v1198_v39, 0.0 }
 0x225   : > { %v616_v47 = vadd.f32 %v615_v40, %v614_v33  ;;  %v628_v49 = vadd.f32 %v627_v41, %v626_v34  ;;  %v639_v50 = vrot.slane %v638_v46, 4  ;;  %v804_v25 = vunpack.c.l.bf16 %v1469_v4 }
 0x226   : > { %v636_v51 = vrot.slane %v635_v43, 1  ;;  %v648_v45 = vrot.slane %v647_v44, 2  ;;  %1203 = vrcp.f32 %v623_v42  ;;  %v807_v33 = vunpack.c.h.bf16 %v1467_v3 }
 0x227   : > { %v629_v52 = vrot.slane %v628_v49, 1  ;;  %v640_v53 = vadd.f32 %v639_v50, %v638_v46  ;;  %1205 = vrcp.f32 %v616_v47  ;;  %v806_v35 = vunpack.c.l.bf16 %v1467_v3 }
 0x228   : > { %v637_v48 = vadd.f32 %v636_v51, %v635_v43  ;;  %v649_v54 = vadd.f32 %v648_v45, %v647_v44  ;;  %v809_v50 = vunpack.c.h.bf16 %v1471_v5 }
 0x229   : > { %v630_v57 = vadd.f32 %v629_v52, %v628_v49  ;;  %v641_v56 = vrot.slane %v640_v53, 2  ;;  %v808_v52 = vunpack.c.l.bf16 %v1471_v5 }
 0x22a   : > { %v650_v59 = vrot.slane %v649_v54, 1  ;;  %1207 = vrcp.f32 %v637_v48 }
 0x22b   : > { %v642_v61 = vadd.f32 %v641_v56, %v640_v53  ;;  %1209 = vrcp.f32 %v630_v57 }
 0x22c   : > { %v1200_v60 = vpop.eup %1199  ;;  %v651_v62 = vadd.f32 %v650_v59, %v649_v54 }
 0x22d   : > { %v1202_v63 = vpop.eup %1201  ;;  %v643_v1 = vrot.slane %v642_v61, 1  ;;  %v661_v9 = vmul.f32 %v1200_v60, %v1515_v55 }
 0x22e   : > { %v660_v7 = vmul.f32 %v1202_v63, %v1517_v58  ;;  %1211 = vrcp.f32 %v651_v62 }
 0x22f   : > { %v644_v8 = vadd.f32 %v643_v1, %v642_v61 }
 0x230   : > { %v1204_v10 = vpop.eup %1203  ;;  %1085 = vmatprep.mubr.msk.f32.mxu0 %vm515_vm2, %v660_v7 }
 0x231   : > { %v1206_v11 = vpop.eup %1205  ;;  %1213 = vrcp.f32 %v644_v8  ;;  %1086 = vmatmul.mubr.msk.f32.vlgmr.msra.gmra.mrb[4].mxu0 %vm515_vm2, %v661_v9  ;;  %v663_v13 = vmul.f32 %v1204_v10, %v1523_v0  ;;  %v803_v0 = vunpack.c.h.bf16 %v1465_v2 }
 0x232   : > { %v662_v12 = vmul.f32 %v1206_v11, %v1525_v6 }
 0x234   : > { %v1208_v15 = vpop.eup %1207  ;;  %1088 = vmatprep.mubr.msk.f32.mxu0 %vm515_vm2, %v662_v12 }
 0x235   : > { %v1210_v16 = vpop.eup %1209  ;;  %1089 = vmatmul.mubr.msk.f32.gmra.mrb[6].mxu0 %vm515_vm2, %v663_v13  ;;  %v665_v58 = vmul.f32 %v1208_v15, %v1531_v14 }
 0x236   : > { %v664_v55 = vmul.f32 %v1210_v16, %v1533_v17 }
 0x238   : > { %1091 = vmatprep.mubr.msk.f32.mxu0 %vm515_vm2, %v664_v55  ;;  %v1212_v18 = vpop.eup %1211 }
 0x239   : > { %1092 = vmatmul.mubr.msk.f32.gmra.mrb[8].mxu0 %vm515_vm2, %v665_v58  ;;  %v667_v6 = vmul.f32 %v1212_v18, %v1539_v28 }
 0x23b   : > { %v1214_v19 = vpop.eup %1213 }
 0x23c   : > { %v666_v20 = vmul.f32 %v1214_v19, %v1198_v39 }
 0x23e   : > { %1094 = vmatprep.mubr.msk.f32.mxu0 %vm515_vm2, %v666_v20 }
 0x23f   : > { %1095 = vmatmul.mubr.msk.f32.gmra.mrb[10].mxu0 %vm515_vm2, %v667_v6 }
 0x304   : > { %v1087_v17 = vpop.f32.mrb[4].mxu0 }
 0x305   : > { %v811_v22 = vmul.f32 %v1087_v17, %v803_v0  ;;  %v763_v14 = vpop.f32.mrb[5].mxu0 }
 0x306   : > { %v810_v24 = vmul.f32 %v802_v21, %v763_v14 }
 0x307   : > { %v825_v26 = vsel %vm296_vm0, %v811_v22, 0.0 }
 0x308   : > { %v826_v27 = vrot.slane %v825_v26, 4  ;;  %v818_v28 = vsel %vm296_vm0, %v810_v24, 0.0  ;;  %v1090_v29 = vpop.f32.mrb[6].mxu0 }
 0x309   : > { %v819_v30 = vrot.slane %v818_v28, 4  ;;  %v813_v31 = vmul.f32 %v1090_v29, %v805_v23  ;;  %v773_v32 = vpop.f32.mrb[7].mxu0 }
 0x30a   : > { %v827_v2 = vadd.f32 %v826_v27, %v825_v26  ;;  %v812_v34 = vmul.f32 %v804_v25, %v773_v32 }
 0x30b   : > { %v820_v36 = vadd.f32 %v819_v30, %v818_v28  ;;  %v839_v37 = vsel %vm296_vm0, %v813_v31, 0.0 }
 0x30c   : > { %v828_v38 = vrot.slane %v827_v2, 2  ;;  %v840_v4 = vrot.slane %v839_v37, 4  ;;  %v832_v39 = vsel %vm296_vm0, %v812_v34, 0.0  ;;  %v1093_v40 = vpop.f32.mrb[8].mxu0 }
 0x30d   : > { %v821_v41 = vrot.slane %v820_v36, 2  ;;  %v833_v42 = vrot.slane %v832_v39, 4  ;;  %v815_v43 = vmul.f32 %v1093_v40, %v807_v33  ;;  %v783_v44 = vpop.f32.mrb[9].mxu0 }
 0x30e   : > { %v829_v46 = vadd.f32 %v828_v38, %v827_v2  ;;  %v841_v47 = vadd.f32 %v840_v4, %v839_v37  ;;  %v814_v49 = vmul.f32 %v806_v35, %v783_v44 }
 0x30f   : > { %v822_v51 = vadd.f32 %v821_v41, %v820_v36  ;;  %v834_v45 = vadd.f32 %v833_v42, %v832_v39  ;;  %v853_v3 = vsel %vm296_vm0, %v815_v43, 0.0 }
 0x310   : > { %v830_v53 = vrot.slane %v829_v46, 1  ;;  %v842_v48 = vrot.slane %v841_v47, 2  ;;  %v854_v54 = vrot.slane %v853_v3, 4  ;;  %v846_v57 = vsel %vm296_vm0, %v814_v49, 0.0 }
 0x311   : > { %v823_v56 = vrot.slane %v822_v51, 1  ;;  %v835_v59 = vrot.slane %v834_v45, 2  ;;  %v847_v61 = vrot.slane %v846_v57, 4 }
 0x312   : > { %v831_v60 = vadd.f32 %v830_v53, %v829_v46  ;;  %v843_v62 = vadd.f32 %v842_v48, %v841_v47  ;;  %v855_v63 = vadd.f32 %v854_v54, %v853_v3  ;;  %v1096_v1 = vpop.f32.mrb[10].mxu0 }
 0x313   : > { %v824_v7 = vadd.f32 %v823_v56, %v822_v51  ;;  %v836_v8 = vadd.f32 %v835_v59, %v834_v45  ;;  %v848_v9 = vadd.f32 %v847_v61, %v846_v57  ;;  %v817_v10 = vmul.f32 %v1096_v1, %v809_v50  ;;  %v793_v11 = vpop.f32.mrb[11].mxu0 }
 0x314   : > { %v844_v12 = vrot.slane %v843_v62, 1  ;;  %v856_v5 = vrot.slane %v855_v63, 2  ;;  %v816_v13 = vmul.f32 %v808_v52, %v793_v11 }
 0x315   : > { %v883_v15 = vsel %vm882_vm3, %v831_v60, %v824_v7  ;;  %v837_v16 = vrot.slane %v836_v8, 1  ;;  %v849_v55 = vrot.slane %v848_v9, 2  ;;  %v867_v58 = vsel %vm296_vm0, %v817_v10, 0.0 }
 0x316   : > { %v857_v18 = vadd.f32 %v856_v5, %v855_v63  ;;  %v868_v19 = vrot.slane %v867_v58, 4  ;;  %v860_v20 = vsel %vm296_vm0, %v816_v13, 0.0  ;;  %v845_v17 = vadd.f32 %v844_v12, %v843_v62 }
 0x317   : > { %v838_v6 = vadd.f32 %v837_v16, %v836_v8  ;;  %v850_v0 = vadd.f32 %v849_v55, %v848_v9  ;;  %v861_v21 = vrot.slane %v860_v20, 4 }
 0x318   : > { %v858_v22 = vrot.slane %v857_v18, 1  ;;  %v869_v14 = vadd.f32 %v868_v19, %v867_v58 }
 0x319   : > { %v885_v23 = vsel %vm884_vm4, %v838_v6, %v883_v15  ;;  %v851_v24 = vrot.slane %v850_v0, 1  ;;  %v862_v25 = vadd.f32 %v861_v21, %v860_v20 }
 0x31a   : > { %v887_v26 = vsel %vm886_vm5, %v845_v17, %v885_v23  ;;  %v870_v27 = vrot.slane %v869_v14, 2  ;;  %v859_v30 = vadd.f32 %v858_v22, %v857_v18 }
 0x31b   : > { %v852_v28 = vadd.f32 %v851_v24, %v850_v0  ;;  %v863_v29 = vrot.slane %v862_v25, 2 }
 0x31c   : > { %v871_v31 = vadd.f32 %v870_v27, %v869_v14 }
 0x31d   : > { %v889_v32 = vsel %vm888_vm6, %v852_v28, %v887_v26  ;;  %v864_v33 = vadd.f32 %v863_v29, %v862_v25 }
 0x31e   : > { %v872_v2 = vrot.slane %v871_v31, 1  ;;  %v891_v34 = vsel %vm890_vm7, %v859_v30, %v889_v32 }
 0x31f   : > { %v865_v35 = vrot.slane %v864_v33, 1 }
 0x320   : > { %v873_v37 = vadd.f32 %v872_v2, %v871_v31 }
 0x321   : > { %v866_v36 = vadd.f32 %v865_v35, %v864_v33 }
 0x323   : > { %v893_v38 = vsel %vm892_vm8, %v866_v36, %v891_v34 }
 0x324   : > { %v895_v4 = vsel %vm894_vm9, %v873_v37, %v893_v38 }
 0x325   : > { %897 = vst.msk [vmem:[%s242_s16] sm:$0xff] %vm296_vm0, %v895_v4 }
 0x326   : > { %1258 = shalt.err (!%p1255_p2)
}
 0x327   : > { %s1259_s23 = scalar_lea.hbm %s1580_s9, 128  ;;  %s1263_s28 = scalar_lea.hbm %s1630_s5, 256 }
 0x328   : > { %p1260_p4 = scmp.ne.s32.totalorder %s1580_s9, %s1259_s23  ;;  %p1264_p9 = scmp.lt.u32.totalorder %s1580_s9, %s1630_s5 }
 0x329   : > { %p1265_p1 = scmp.lt.u32.totalorder %s1263_s28, %s1259_s23  ;;  %p1267_p6 = scmp.lt.u32.totalorder %s1259_s23, %s1580_s9 }
 0x32a   : > { %p1261_p5 = pnand %p1260_p4, %p1637_p11 }
 0x32b   : > { %p1266_p3 = por %p1265_p1, %p1264_p9 }
 0x32c   : > { %p1262_p7 = pneg %p1261_p5 }
 0x32d   : > { %p1268_p12 = por %p1267_p6, %p1266_p3 }
 0x32f   : > { %p1269_p13 = pnand %p1268_p12, %p1262_p7 }
 0x331   : > { %1272 = shalt.err (!%p1269_p13)
}
 0x332   : > { %1111 = dma.vmem_to_hbm [thread:$0]  (%p1637_p11), %s1582_s29, 128, %s1580_s9, %s899_s22  }
 0x333 PF: > { %s924_s14 = sand.u32 1, %s1299_s18   ;;  %p1638_p8 = scmp.ne.s32.totalorder %s1635_s6, 0 }
 0x334   : > { %p1639_p10 = scmp.ge.s32.totalorder %s1311_s21, 2  ;;  %s925_s16 = scalar_lea.sflag [#allocation4], %s924_s14 }
 0x336   : > { %p1118_p0 = pnand %p1639_p10, %p1638_p8 }
 0x338   : > { %1294 = dma.done.wait (!%p1118_p0), %s925_s16, 128  }
 0x339   : > { %1296 = vsyncadd (!%p1118_p0), %s925_s16, 4294967168  ;;  %p18_p2 = scmp.ge.s32.totalorder %s1372_s24, 4   ;;  %s1640_s18 = smov %s1303_s19 }
 0x33a   : > { %s1641_s19 = smov %s1307_s20  ;;  %s1642_s20 = smov %s1384_s27 }
 0x33b   : > { %s1643_s21 = smov %s1372_s24  ;;  %20 = sbr.rel (!%p18_p2) target bundleno = 5 (0x5), region = 85 }
 0x342   :  { %930 = vsyncpa [#allocation3], 1 }
 0x343   :  { %932 = vsyncpa [#allocation3 + $0x1], 1 }
 0x344   :  { %933 = vsyncpa [#allocation4], 1 }
 0x345   :  { %935 = vsyncpa [#allocation4 + $0x1], 1 }

</bundles_post_ra>
